<compile_context>
chip_gen: v7x
topology: tpu7x:2x2x1
jax: 0.10.0
libtpu: 0.0.40
codegen_flags: <defaults>
</compile_context>

<pallas_src>
import functools

import numpy as np
import jax
import jax.numpy as jnp
from jax.experimental import pallas as pl
from jax.experimental.pallas import tpu as pltpu


# ---------------------------------------------------------------------------
# MXU path: o[b] = W @ x[b], replicate padding + 1/K band folded into W.
# ---------------------------------------------------------------------------
def _mxu_kernel(w_ref, x_ref, o_ref):
    """w_ref: (L_out, L) f32; x_ref: (b_blk, L, Cb); o_ref: (b_blk, L_out, Cb)."""
    w = w_ref[...]
    for bidx in range(x_ref.shape[0]):  # b_blk is small and static
        o_ref[bidx] = jnp.dot(
            w,
            x_ref[bidx].astype(jnp.float32),
            preferred_element_type=jnp.float32,
        ).astype(o_ref.dtype)


def _build_weight_matrix(seq_len, kernel_size, stride, pad, l_out):
    """(L_out, L): replicate-pad operator composed with the 1/K averaging band."""
    l_pad = seq_len + 2 * pad
    p = np.arange(l_pad)
    src = np.clip(p - pad, 0, seq_len - 1)  # padded index -> source index
    pad_op = np.zeros((l_pad, seq_len), np.float32)
    pad_op[p, src] = 1.0
    t0 = np.arange(l_out)[:, None] * stride
    band = ((p[None, :] >= t0) & (p[None, :] < t0 + kernel_size)).astype(np.float32)
    return jnp.asarray((band @ pad_op) / float(kernel_size))


# ---------------------------------------------------------------------------
# Block-size selection (VMEM-budget aware, lane-dense).
# ---------------------------------------------------------------------------
def _pick_channel_block(per_channel_bytes, channels, target_bytes):
    """Lane-dense channel block keeping one block's bytes <= target_bytes."""
    if channels <= 128 or per_channel_bytes * channels <= target_bytes:
        return channels
    max_c = max(128, (target_bytes // per_channel_bytes) // 128 * 128)
    if channels % 128 == 0:
        best = 128
        cand = 256
        while cand <= min(channels, max_c):
            if channels % cand == 0:
                best = cand
            cand += 128
        return int(best)
    # Large non-128-multiple C: lane-dense 128-multiple block with a masked
    # (cdiv) tail block instead of an unbounded full-C block.
    return int(min(max_c, (channels // 128) * 128))


def _pick_batch_block(batch, n_c, per_batch_bytes, target_bytes):
    """Fold batch rows into one block to amortize per-step overhead."""
    b_blk = 1
    for cand in range(1, batch + 1):
        if batch % cand == 0 and cand * per_batch_bytes <= target_bytes:
            b_blk = cand
    # Keep >= 2 grid steps when possible so both v7x TensorCores get work.
    while b_blk > 1 and (batch // b_blk) * n_c < 2:
        b_blk -= 1
        while batch % b_blk:
            b_blk -= 1
    return b_blk


def _moving_avg_mxu(x, kernel_size, stride, pad, l_out, target_block_bytes):
    b, seq_len, channels = x.shape
    itemsize = x.dtype.itemsize
    w = _build_weight_matrix(seq_len, kernel_size, stride, pad, l_out)

    per_channel_bytes = (seq_len + l_out) * itemsize
    c_blk = _pick_channel_block(per_channel_bytes, channels, target_block_bytes)
    n_c = pl.cdiv(channels, c_blk)

    b_blk = _pick_batch_block(b, n_c, per_channel_bytes * c_blk, target_block_bytes)
    n_b = b // b_blk

    # If everything collapsed into a single grid step, split the channel axis
    # so both v7x TensorCores get work (free 2x for this parallel op).
    if n_b * n_c < 2 and c_blk == channels and channels % 256 == 0:
        c_blk = channels // 2
        n_c = 2

    est = (
        2 * int(w.size) * 4
        + 2 * b_blk * seq_len * c_blk * itemsize
        + 2 * b_blk * l_out * c_blk * itemsize
        + b_blk * l_out * c_blk * 4
    )
    vmem_limit = int(min(max(2 * est, 16 << 20), 48 << 20))

    return pl.pallas_call(
        _mxu_kernel,
        out_shape=jax.ShapeDtypeStruct((b, l_out, channels), x.dtype),
        grid=(n_b, n_c),
        in_specs=[
            pl.BlockSpec((l_out, seq_len), lambda i, j: (0, 0)),  # W stays resident
            pl.BlockSpec((b_blk, seq_len, c_blk), lambda i, j: (i, 0, j)),
        ],
        out_specs=pl.BlockSpec((b_blk, l_out, c_blk), lambda i, j: (i, 0, j)),
        compiler_params=pltpu.CompilerParams(
            dimension_semantics=("parallel", "parallel"),
            vmem_limit_bytes=vmem_limit,
        ),
    )(w, x)


# ---------------------------------------------------------------------------
# VPU fallback (very long sequences only): shifted-add over a padded scratch.
# ---------------------------------------------------------------------------
def _vpu_kernel(x_ref, o_ref, xp_ref, *, kernel_size, stride, pad, l_out):
    """x_ref: (1, L, Cb); o_ref: (1, L_out, Cb); xp_ref: (L+2*pad, Cb) scratch."""
    l_in = x_ref.shape[1]
    cb = x_ref.shape[2]

    xp_ref[pl.ds(pad, l_in), :] = x_ref[0]
    if pad > 0:
        first = x_ref[0, 0:1, :]
        last = x_ref[0, l_in - 1 : l_in, :]
        xp_ref[pl.ds(0, pad), :] = jnp.broadcast_to(first, (pad, cb))
        xp_ref[pl.ds(pad + l_in, pad), :] = jnp.broadcast_to(last, (pad, cb))

    acc = jnp.zeros((l_out, cb), jnp.float32)
    for k in range(kernel_size):
        if stride == 1:
            term = xp_ref[pl.ds(k, l_out), :]
        else:
            term = xp_ref[pl.ds(k, l_out, stride=stride), :]
        acc = acc + term.astype(jnp.float32)

    o_ref[0] = (acc * (1.0 / kernel_size)).astype(o_ref.dtype)


def _moving_avg_vpu(x, kernel_size, stride, pad, l_out, target_block_bytes):
    b, seq_len, channels = x.shape
    l_pad = seq_len + 2 * pad
    itemsize = x.dtype.itemsize

    per_channel_bytes = (seq_len + l_pad + l_out) * itemsize
    c_blk = _pick_channel_block(per_channel_bytes, channels, target_block_bytes)
    n_c = pl.cdiv(channels, c_blk)

    est = (
        2 * seq_len * c_blk * itemsize
        + 2 * l_out * c_blk * itemsize
        + l_pad * c_blk * itemsize
        + l_out * c_blk * 4
    )
    vmem_limit = int(min(max(2 * est, 16 << 20), 48 << 20))

    kernel = functools.partial(
        _vpu_kernel, kernel_size=kernel_size, stride=stride, pad=pad, l_out=l_out
    )
    return pl.pallas_call(
        kernel,
        out_shape=jax.ShapeDtypeStruct((b, l_out, channels), x.dtype),
        grid=(b, n_c),
        in_specs=[pl.BlockSpec((1, seq_len, c_blk), lambda i, j: (i, 0, j))],
        out_specs=pl.BlockSpec((1, l_out, c_blk), lambda i, j: (i, 0, j)),
        scratch_shapes=[pltpu.VMEM((l_pad, c_blk), x.dtype)],
        compiler_params=pltpu.CompilerParams(
            dimension_semantics=("parallel", "parallel"),
            vmem_limit_bytes=vmem_limit,
        ),
    )(x)


# ---------------------------------------------------------------------------
# Public entry point.
# ---------------------------------------------------------------------------
def moving_avg(x, kernel_size, stride, *, force_path=None, target_block_bytes=4 << 20):
    """x: (B, L, C) -> (B, L_out, C); matches torch MovingAvg.forward."""
    b, seq_len, channels = x.shape
    pad = (kernel_size - 1) // 2
    l_pad = seq_len + 2 * pad
    l_out = (l_pad - kernel_size) // stride + 1

    w_bytes = l_out * seq_len * 4
    use_mxu = force_path == "mxu" or (force_path is None and w_bytes <= (4 << 20))
    if use_mxu:
        return _moving_avg_mxu(x, kernel_size, stride, pad, l_out, target_block_bytes)
    return _moving_avg_vpu(x, kernel_size, stride, pad, l_out, target_block_bytes)


def _reference(x, kernel_size, stride):
    # Pure-JAX reference mirroring the PyTorch code.
    pad = (kernel_size - 1) // 2
    front = jnp.repeat(x[:, 0:1, :], pad, axis=1)
    end = jnp.repeat(x[:, -1:, :], pad, axis=1)
    xp = jnp.concatenate([front, x, end], axis=1)
    l_out = (xp.shape[1] - kernel_size) // stride + 1
    windows = jnp.stack(
        [xp[:, t * stride : t * stride + kernel_size, :] for t in range(l_out)],
        axis=1,
    )  # (B, L_out, K, C)
    return windows.mean(axis=2).astype(x.dtype)


if __name__ == "__main__":
    keys = jax.random.split(jax.random.PRNGKey(0), 3)

    # Config 1: matches the original module test — MovingAvg(5, 1), x (2, 16, 8).
    x1 = jax.random.normal(keys[0], (2, 16, 8), dtype=jnp.float32)
    out1 = jax.block_until_ready(moving_avg(x1, kernel_size=5, stride=1))
    ref1 = _reference(x1, 5, 1)
    assert out1.shape == ref1.shape, (out1.shape, ref1.shape)
    assert jnp.allclose(out1, ref1, atol=2e-5, rtol=2e-5)

    # Config 2: Autoformer-style decomposition window (K=25), lane-dense C=128.
    x2 = jax.random.normal(keys[1], (2, 64, 128), dtype=jnp.float32)
    out2 = jax.block_until_ready(moving_avg(x2, kernel_size=25, stride=1))
    ref2 = _reference(x2, 25, 1)
    assert out2.shape == ref2.shape, (out2.shape, ref2.shape)
    assert jnp.allclose(out2, ref2, atol=2e-5, rtol=2e-5)

    # Config 3: stride > 1 (now exercised; handled by W construction on MXU path).
    x3 = jax.random.normal(keys[2], (2, 32, 128), dtype=jnp.float32)
    out3 = jax.block_until_ready(moving_avg(x3, kernel_size=7, stride=2))
    ref3 = _reference(x3, 7, 2)
    assert out3.shape == ref3.shape, (out3.shape, ref3.shape)
    assert jnp.allclose(out3, ref3, atol=2e-5, rtol=2e-5)

    # Config 4: force the long-sequence VPU fallback at a small shape so that
    # code path stays runtime-verified too.
    out4 = jax.block_until_ready(
        moving_avg(x2, kernel_size=25, stride=1, force_path="vpu")
    )
    assert jnp.allclose(out4, ref2, atol=1e-5, rtol=1e-5)

    print("KERNEL_OK")
</pallas_src>

<mosaic_0001>
module attributes {stable_mosaic.version = 11 : i64} {
  func.func @_mxu_kernel(%arg0: i32, %arg1: i32, %arg2: memref<16x16xf32, #tpu.memory_space<vmem>>, %arg3: memref<1x16x8xf32, #tpu.memory_space<vmem>>, %arg4: memref<1x16x8xf32, #tpu.memory_space<vmem>>) attributes {dimension_semantics = [#tpu.dimension_semantics<parallel>, #tpu.dimension_semantics<parallel>], iteration_bounds = array<i64: 2, 1>, scalar_prefetch = 0 : i64, scratch_operands = 0 : i64, tpu.core_type = #tpu.core_type<tc>, window_params = [{pipeline_mode = #tpu.pipeline_mode<synchronous>, transform_indices = @transform_0, window_bounds = array<i64: 16, 16>}, {transform_indices = @transform_1, window_bounds = array<i64: 1, 16, 8>}, {transform_indices = @transform_2, window_bounds = array<i64: 1, 16, 8>}]} {
    %c0 = arith.constant 0 : index
    %c0_0 = arith.constant 0 : index
    %0 = vector.load %arg2[%c0, %c0_0] : memref<16x16xf32, #tpu.memory_space<vmem>>, vector<16x16xf32>
    %c0_1 = arith.constant 0 : index
    %c0_2 = arith.constant 0 : index
    %c0_3 = arith.constant 0 : index
    %1 = vector.load %arg3[%c0_1, %c0_2, %c0_3] : memref<1x16x8xf32, #tpu.memory_space<vmem>>, vector<1x16x8xf32>
    %2 = vector.shape_cast %1 : vector<1x16x8xf32> to vector<16x8xf32>
    %cst = arith.constant dense<0.000000e+00> : vector<16x8xf32>
    %3 = tpu.matmul %0, %2, %cst {dimension_numbers = #tpu.dot_dimension_numbers<[1], [0], [0], [1], [0, 0, 1, 1], [], []>} : vector<16x16xf32>, vector<16x8xf32>, vector<16x8xf32> -> vector<16x8xf32>
    %c0_4 = arith.constant 0 : index
    %c0_5 = arith.constant 0 : index
    %c0_6 = arith.constant 0 : index
    %4 = vector.load %arg4[%c0_4, %c0_5, %c0_6] : memref<1x16x8xf32, #tpu.memory_space<vmem>>, vector<1x16x8xf32>
    %5 = vector.shape_cast %4 : vector<1x16x8xf32> to vector<16x8xf32>
    %6 = vector.shape_cast %3 : vector<16x8xf32> to vector<1x16x8xf32>
    tpu.vector_store %arg4[%c0_4, %c0_5, %c0_6], %6 {strides = array<i32>} : memref<1x16x8xf32, #tpu.memory_space<vmem>>, vector<1x16x8xf32>,
    return
  }
  func.func @transform_0(%arg0: i32, %arg1: i32) -> (i32, i32) {
    %c0_i32 = arith.constant 0 : i32
    %c0_i32_0 = arith.constant 0 : i32
    %c0_i32_1 = arith.constant 0 : i32
    return %c0_i32, %c0_i32_0 : i32, i32
  }
  func.func @transform_1(%arg0: i32, %arg1: i32) -> (i32, i32, i32) {
    %c0_i32 = arith.constant 0 : i32
    %c0_i32_0 = arith.constant 0 : i32
    return %arg0, %c0_i32, %arg1 : i32, i32, i32
  }
  func.func @transform_2(%arg0: i32, %arg1: i32) -> (i32, i32, i32) {
    %c0_i32 = arith.constant 0 : i32
    %c0_i32_0 = arith.constant 0 : i32
    return %arg0, %c0_i32, %arg1 : i32, i32, i32
  }
}

</mosaic_0001>

<bundles_post_ra>
// kernel: tpu_custom_call.1
= control target key start
LH: loop header
LB: loop body
LE: loop exit
PB: predicated region body
PF: predicated region fallthrough
CT: control target
= control target key end

     0   :  { %s440_s9 = smov 0   ;;  %s442_s10 = smov 0   ;;  %s476_s0 = inlined_call_operand.vmem [shape: f32[16,16], index: 0, kind: input, shape index: {}]   ;;  %s477_s1 = inlined_call_operand.vmem [shape: f32[2,16,8], index: 1, kind: input, shape index: {}]   ;;  %s478_s2 = inlined_call_operand.vmem [shape: f32[2,16,8], index: 2, kind: output, shape index: {}]  }
   0x1   :  { %s444_s11 = smov 0  }
   0x2 LB: > { %s24_s12 = sadd.s32 1, %s419_s10  ;;  %p351_p0 = scmp.ge.s32.totalorder %s423_s11, 1  ;;  %s423_s11 = sphi %s444_s11, %s12_s11   ;;  %s419_s10 = sphi %s442_s10, %s480_s10   ;;  %s415_s9 = sphi %s440_s9, %s479_s9  }
   0x3   : > { %p26_p1 = scmp.ge.s32.totalorder %s24_s12, 2  ;;  %p131_p2 = scmp.lt.s32.totalorder %s423_s11, 3 }
   0x5   : > { %s482_s12 = smov (%p26_p1, %s24_s12), 0  ;;  %p132_p3 = pnand %p351_p0, %p131_p2 }
   0x6   : > { %p159_p4 = scmp.lt.s32.totalorder (!%p132_p3), %s415_s9, 1  ;;  %v175_v0 = vld [vmem:[%s476_s0] sm:$0xff] (!%p132_p3)  ;;  %vm179_vm0 = vcmask (!%p132_p3), 130048   ;;  %v176_v4 = vld [vmem:[%s476_s0 + $0x8] sm:$0xff] (!%p132_p3)  ;;  %vm261_vm1 = vcmask (!%p132_p3), 64512  }
   0x7   : > { %135 = sbr.rel (%p132_p3) target bundleno = 238 (0xee), region = 28  ;;  %370 = vmatprep.mubr.msk.f32.mxu0 (!%p132_p3), %vm179_vm0, %v175_v0 }
   0xe   : > { %s484_s9 = smov (!%p159_p4, %s415_s9), 1 }
   0xf   : > { %s360_s15 = sshll.u32 %s484_s9, 4 }
  0x10   : > { %s166_s18 = scalar_lea.vmem %s477_s1, %s360_s15  ;;  %s174_s23 = scalar_lea.vmem %s478_s2, %s360_s15 }
  0x11   : > { %v177_v1 = vld [vmem:[%s166_s18] sm:$0xff]  ;;  %v178_v2 = vld [vmem:[%s166_s18 + $0x8] sm:$0xff] }
  0x12   : > { %v373_v3 = vpack.c.bf16 %v178_v2, %v177_v1 }
  0x14   : > { %374 = vmatprep.subr.bf16.mxu0 %v373_v3 }
  0x15   : > { %376 = vmatpush3.bf16.msra.mxu0 %v373_v3 }
  0x18   : > { %371 = vmatmul.mubr.msk.f32.vlgmr.msra.gmra.mrb[0].mxu0 %vm179_vm0, %v176_v4 }
  0xeb   : > { %v372_v5 = vpop.f32.mrb[0].mxu0 }
  0xec   : > { %263 = vst.msk [vmem:[%s174_s23 + $0x8] sm:$0xff] %vm261_vm1, %v372_v5  ;;  %v252_v6 = vpop.f32.mrb[1].mxu0 }
  0xed   : > { %262 = vst.msk [vmem:[%s174_s23] sm:$0xff] %vm261_vm1, %v252_v6 }
  0xee PF: > { %s12_s11 = sadd.s32 1, %s423_s11   ;;  %s479_s9 = smov %s419_s10 }
  0xef   : > { %p9_p5 = scmp.ge.s32.totalorder %s12_s11, 4   ;;  %s480_s10 = smov %s482_s12 }
  0xf1   :  { %11 = sbr.rel (!%p9_p5) target bundleno = 2 (0x2), region = 58 }

</bundles_post_ra>
